<compile_context>
chip_gen: v5e
topology: v5e:2x2
jax: 0.10.0
libtpu: 0.0.40
codegen_flags: <defaults>
</compile_context>

<pallas_src>
import functools

import jax
import jax.numpy as jnp
from jax.experimental import pallas as pl
from jax.experimental.pallas import tpu as pltpu

SOBEL_X = ((-1.0, 0.0, 1.0),
           (-2.0, 0.0, 2.0),
           (-1.0, 0.0, 1.0))
SOBEL_Y = ((-1.0, -2.0, -1.0),
           ( 0.0,  0.0,  0.0),
           ( 1.0,  2.0,  1.0))
EPS = float(jnp.finfo(jnp.float32).eps)  # == torch.finfo(torch.float32).eps


# ----------------------------- in-kernel helpers -----------------------------

def _shift_rows(x, s):
    """y[i, :] = x[i+s, :], zero-filled at the top/bottom boundary. s in {+1,-1}."""
    zero = jnp.zeros_like(x[:1, :])
    if s == 1:
        return jnp.concatenate([x[1:, :], zero], axis=0)
    return jnp.concatenate([zero, x[:-1, :]], axis=0)


def _shift_cols(x, s, edge_mask):
    """y[:, l] = x[:, l+s] within each lane-packed image, zero across image edges.

    `edge_mask` (1, L) is 0 on lanes whose source column l+s would belong to a
    neighbouring packed image (or fall outside the packed slab), 1 elsewhere.
    """
    zero = jnp.zeros_like(x[:, :1])
    if s == 1:
        y = jnp.concatenate([x[:, 1:], zero], axis=1)
    else:
        y = jnp.concatenate([zero, x[:, :-1]], axis=1)
    return y * edge_mask


# --------------------------------- kernel ------------------------------------

def rngf_kernel(pred_ref, targ_ref, mask_ref, seg_ref, edge_l_ref, edge_r_ref,
                out_ref, *, eta):
    pred = pred_ref[...]           # (H, L) f32, L = Bt*W lane-packed images
    targ = targ_ref[...]           # (H, L)
    m = mask_ref[...]              # (H, L)
    seg = seg_ref[...]             # (Bt, L) one-hot image-segment matrix
    e_l = edge_l_ref[...]          # (1, L): 0 where reading col l-1 crosses an image edge
    e_r = edge_r_ref[...]          # (1, L): 0 where reading col l+1 crosses an image edge

    # per-image eta / sum(mask): hoisted, shared by both normalized gradients.
    # (All-zero mask -> inf/NaN, same hazard as the PyTorch module.)
    col_m = jnp.sum(m, axis=0, keepdims=True)                 # (1, L)
    msum = jnp.sum(seg * col_m, axis=1, keepdims=True)        # (Bt, 1)
    eta_over_msum = eta / msum                                 # (Bt, 1)

    def normalized_grad(img):
        # Separable Sobel (cross-correlation, zero padding = 1):
        #   gx = [-1,0,1]_cols applied to [1,2,1]_rows-smoothed image
        #   gy = [-1,0,1]_rows applied to [1,2,1]_cols-smoothed image
        a = _shift_rows(img, -1) + 2.0 * img + _shift_rows(img, +1)
        b = _shift_cols(img, -1, e_l) + 2.0 * img + _shift_cols(img, +1, e_r)
        gx = _shift_cols(a, +1, e_r) - _shift_cols(a, -1, e_l)
        gy = _shift_rows(b, +1) - _shift_rows(b, -1)

        gsq = gx * gx + gy * gy
        norm = jnp.sqrt(gsq + EPS)
        col_nm = jnp.sum(norm * m, axis=0, keepdims=True)       # (1, L)
        nsum = jnp.sum(seg * col_nm, axis=1, keepdims=True)     # (Bt, 1)
        aeps = eta_over_msum * nsum                             # (Bt, 1) per-image auto_eps
        aeps_ln = jnp.sum(seg * aeps, axis=0, keepdims=True)    # (1, L) back to lanes
        inv = jax.lax.rsqrt(gsq + aeps_ln * aeps_ln + EPS)      # EUP rsqrt (no divide)
        return gx * inv, gy * inv

    # fixed (target) gradient is .detach() in torch -> same forward value
    gxt, gyt = normalized_grad(targ)
    gxp, gyp = normalized_grad(pred)

    inner = gxt * gxp + gyt * gyp                               # channel inner product
    # per-grid-step partial: column sums of inner^2 (summed over the batch block in JAX)
    out_ref[...] = jnp.sum(inner * inner, axis=0, keepdims=True)


# --------------------------------- wrapper -----------------------------------

def _pick_lane_pack(B, W, max_lanes=512):
    """Largest divisor Bt of B with Bt*W <= max_lanes (lane-dense packing)."""
    if W >= max_lanes:
        return 1
    best = 1
    for d in range(1, B + 1):
        if B % d == 0 and d * W <= max_lanes:
            best = d
    return best


def single_scale_rngf(pred, target, mask, eta=1.0):
    """pred, target, mask: (B, 1, H, W) (NCHW, single channel). Returns scalar loss."""
    B, C, H, W = pred.shape
    assert C == 1, "SingleScaleRNGF 2-D path expects single-channel images"

    bt = _pick_lane_pack(B, W)
    G = B // bt
    L = bt * W

    def pack(x):
        x = x[:, 0].astype(jnp.float32)                                     # (B, H, W)
        return x.reshape(G, bt, H, W).transpose(0, 2, 1, 3).reshape(G, H, L)

    pred_p, targ_p, mask_p = pack(pred), pack(target), pack(mask)

    # Tiny per-lane constants: image-edge masks + one-hot segment matrix.
    lane = jnp.arange(L, dtype=jnp.int32)
    edge_r = (lane % W != W - 1).astype(jnp.float32)[None, :]   # may read column l+1
    edge_l = (lane % W != 0).astype(jnp.float32)[None, :]       # may read column l-1
    seg = (lane[None, :] // W ==
           jnp.arange(bt, dtype=jnp.int32)[:, None]).astype(jnp.float32)    # (bt, L)

    kernel = functools.partial(rngf_kernel, eta=float(eta))

    partial_cols = pl.pallas_call(
        kernel,
        out_shape=jax.ShapeDtypeStruct((G, 1, L), jnp.float32),
        grid=(G,),
        in_specs=[
            pl.BlockSpec((pl.Squeezed(), H, L), lambda g: (g, 0, 0)),
            pl.BlockSpec((pl.Squeezed(), H, L), lambda g: (g, 0, 0)),
            pl.BlockSpec((pl.Squeezed(), H, L), lambda g: (g, 0, 0)),
            pl.BlockSpec((bt, L), lambda g: (0, 0)),
            pl.BlockSpec((1, L), lambda g: (0, 0)),
            pl.BlockSpec((1, L), lambda g: (0, 0)),
        ],
        out_specs=pl.BlockSpec((pl.Squeezed(), 1, L), lambda g: (g, 0, 0)),
        compiler_params=pltpu.CompilerParams(
            dimension_semantics=("parallel",)),
    )(pred_p, targ_p, mask_p, seg, edge_l, edge_r)

    sq_sum = jnp.sum(partial_cols)
    return 1.0 - sq_sum / (B * H * W)


# ------------------------------ pure-JAX reference ----------------------------

def _reference_loss(pred, target, mask, eta=1.0):
    """Pure-JAX reference mirroring the PyTorch module (2-D path)."""
    B, _, H, W = pred.shape

    def norm_grad(img):
        x = img[:, 0]
        pad = jnp.pad(x, ((0, 0), (1, 1), (1, 1)))

        def conv(w):
            acc = jnp.zeros_like(x)
            for di in range(3):
                for dj in range(3):
                    acc = acc + w[di][dj] * pad[:, di:di + H, dj:dj + W]
            return acc

        gx, gy = conv(SOBEL_X), conv(SOBEL_Y)
        gsq = gx ** 2 + gy ** 2
        norm = jnp.sqrt(gsq + EPS)
        m = mask[:, 0]
        auto_eps = eta / jnp.sum(m, axis=(1, 2)) * jnp.sum(norm * m, axis=(1, 2))
        auto_eps = auto_eps[:, None, None]
        denom = jnp.sqrt(gsq + auto_eps ** 2 + EPS)
        return gx / denom, gy / denom

    gxt, gyt = norm_grad(target)
    gxp, gyp = norm_grad(pred)
    inner = gxt * gxp + gyt * gyp
    return 1.0 - jnp.mean(inner ** 2)


if __name__ == "__main__":
    B, C, H, W = 2, 1, 16, 16
    key = jax.random.PRNGKey(0)
    k1, k2, k3 = jax.random.split(key, 3)
    pred = jax.random.normal(k1, (B, C, H, W), dtype=jnp.float32)
    target = jax.random.normal(k2, (B, C, H, W), dtype=jnp.float32)
    mask = (jax.random.uniform(k3, (B, C, H, W)) > 0.3).astype(jnp.float32)

    loss = jax.block_until_ready(single_scale_rngf(pred, target, mask, eta=1.0))
    ref = jax.block_until_ready(_reference_loss(pred, target, mask, eta=1.0))

    assert jnp.isfinite(loss), "non-finite loss"
    # 5e-4 tolerance covers EUP rsqrt + reordered-summation rounding
    # (typical observed diff ~1e-6); real logic errors are >> 1e-2.
    assert abs(float(loss) - float(ref)) < 5e-4, (float(loss), float(ref))
    print("KERNEL_OK")
</pallas_src>

<mosaic_0001>
module attributes {stable_mosaic.version = 11 : i64} {
  func.func @rngf_kernel(%arg0: i32, %arg1: memref<1x16x32xf32, #tpu.memory_space<vmem>>, %arg2: memref<1x16x32xf32, #tpu.memory_space<vmem>>, %arg3: memref<1x16x32xf32, #tpu.memory_space<vmem>>, %arg4: memref<2x32xf32, #tpu.memory_space<vmem>>, %arg5: memref<1x32xf32, #tpu.memory_space<vmem>>, %arg6: memref<1x32xf32, #tpu.memory_space<vmem>>, %arg7: memref<1x1x32xf32, #tpu.memory_space<vmem>>) attributes {dimension_semantics = [#tpu.dimension_semantics<parallel>], iteration_bounds = array<i64: 1>, scalar_prefetch = 0 : i64, scratch_operands = 0 : i64, tpu.core_type = #tpu.core_type<tc>, window_params = [{transform_indices = @transform_0, window_bounds = array<i64: 1, 16, 32>}, {transform_indices = @transform_1, window_bounds = array<i64: 1, 16, 32>}, {transform_indices = @transform_2, window_bounds = array<i64: 1, 16, 32>}, {pipeline_mode = #tpu.pipeline_mode<synchronous>, transform_indices = @transform_3, window_bounds = array<i64: 2, 32>}, {pipeline_mode = #tpu.pipeline_mode<synchronous>, transform_indices = @transform_4, window_bounds = array<i64: 1, 32>}, {pipeline_mode = #tpu.pipeline_mode<synchronous>, transform_indices = @transform_5, window_bounds = array<i64: 1, 32>}, {transform_indices = @transform_6, window_bounds = array<i64: 1, 1, 32>}]} {
    %c0 = arith.constant 0 : index
    %c0_0 = arith.constant 0 : index
    %c0_1 = arith.constant 0 : index
    %0 = vector.load %arg1[%c0, %c0_0, %c0_1] : memref<1x16x32xf32, #tpu.memory_space<vmem>>, vector<1x16x32xf32>
    %1 = vector.shape_cast %0 : vector<1x16x32xf32> to vector<16x32xf32>
    %c0_2 = arith.constant 0 : index
    %c0_3 = arith.constant 0 : index
    %c0_4 = arith.constant 0 : index
    %2 = vector.load %arg2[%c0_2, %c0_3, %c0_4] : memref<1x16x32xf32, #tpu.memory_space<vmem>>, vector<1x16x32xf32>
    %3 = vector.shape_cast %2 : vector<1x16x32xf32> to vector<16x32xf32>
    %c0_5 = arith.constant 0 : index
    %c0_6 = arith.constant 0 : index
    %c0_7 = arith.constant 0 : index
    %4 = vector.load %arg3[%c0_5, %c0_6, %c0_7] : memref<1x16x32xf32, #tpu.memory_space<vmem>>, vector<1x16x32xf32>
    %5 = vector.shape_cast %4 : vector<1x16x32xf32> to vector<16x32xf32>
    %c0_8 = arith.constant 0 : index
    %c0_9 = arith.constant 0 : index
    %6 = vector.load %arg4[%c0_8, %c0_9] : memref<2x32xf32, #tpu.memory_space<vmem>>, vector<2x32xf32>
    %c0_10 = arith.constant 0 : index
    %c0_11 = arith.constant 0 : index
    %7 = vector.load %arg5[%c0_10, %c0_11] : memref<1x32xf32, #tpu.memory_space<vmem>>, vector<1x32xf32>
    %c0_12 = arith.constant 0 : index
    %c0_13 = arith.constant 0 : index
    %8 = vector.load %arg6[%c0_12, %c0_13] : memref<1x32xf32, #tpu.memory_space<vmem>>, vector<1x32xf32>
    %cst = arith.constant dense<0.000000e+00> : vector<32xf32>
    %9 = vector.multi_reduction <add>, %5, %cst [0] : vector<16x32xf32> to vector<32xf32>
    %10 = vector.shape_cast %9 : vector<32xf32> to vector<1x32xf32>
    %11 = vector.broadcast %10 : vector<1x32xf32> to vector<2x32xf32>
    %12 = arith.mulf %6, %11 : vector<2x32xf32>
    %cst_14 = arith.constant dense<0.000000e+00> : vector<2xf32>
    %13 = vector.multi_reduction <add>, %12, %cst_14 [1] : vector<2x32xf32> to vector<2xf32>
    %14 = vector.shape_cast %13 : vector<2xf32> to vector<2x1xf32>
    %cst_15 = arith.constant 1.000000e+00 : f32
    %15 = vector.broadcast %cst_15 : f32 to vector<2x1xf32>
    %16 = arith.divf %15, %14 : vector<2x1xf32>
    %cst_16 = arith.constant 0.000000e+00 : f32
    %17 = vector.broadcast %cst_16 : f32 to vector<1x32xf32>
    %18 = vector.extract_strided_slice %3 {offsets = [0, 0], sizes = [15, 32], strides = [1, 1]} : vector<16x32xf32> to vector<15x32xf32>
    %19 = tpu.concatenate %17, %18 in 0 : vector<1x32xf32>, vector<15x32xf32> -> vector<16x32xf32>
    %cst_17 = arith.constant 2.000000e+00 : f32
    %20 = vector.broadcast %cst_17 : f32 to vector<16x32xf32>
    %21 = arith.mulf %20, %3 : vector<16x32xf32>
    %22 = arith.addf %19, %21 : vector<16x32xf32>
    %cst_18 = arith.constant 0.000000e+00 : f32
    %23 = vector.broadcast %cst_18 : f32 to vector<1x32xf32>
    %24 = vector.extract_strided_slice %3 {offsets = [1, 0], sizes = [15, 32], strides = [1, 1]} : vector<16x32xf32> to vector<15x32xf32>
    %25 = tpu.concatenate %24, %23 in 0 : vector<15x32xf32>, vector<1x32xf32> -> vector<16x32xf32>
    %26 = arith.addf %22, %25 : vector<16x32xf32>
    %cst_19 = arith.constant 0.000000e+00 : f32
    %27 = vector.broadcast %cst_19 : f32 to vector<16x1xf32>
    %28 = vector.extract_strided_slice %3 {offsets = [0, 0], sizes = [16, 31], strides = [1, 1]} : vector<16x32xf32> to vector<16x31xf32>
    %29 = tpu.concatenate %27, %28 in 1 : vector<16x1xf32>, vector<16x31xf32> -> vector<16x32xf32>
    %30 = vector.broadcast %7 : vector<1x32xf32> to vector<16x32xf32>
    %31 = arith.mulf %29, %30 : vector<16x32xf32>
    %cst_20 = arith.constant 2.000000e+00 : f32
    %32 = vector.broadcast %cst_20 : f32 to vector<16x32xf32>
    %33 = arith.mulf %32, %3 : vector<16x32xf32>
    %34 = arith.addf %31, %33 : vector<16x32xf32>
    %cst_21 = arith.constant 0.000000e+00 : f32
    %35 = vector.broadcast %cst_21 : f32 to vector<16x1xf32>
    %36 = vector.extract_strided_slice %3 {offsets = [0, 1], sizes = [16, 31], strides = [1, 1]} : vector<16x32xf32> to vector<16x31xf32>
    %37 = tpu.concatenate %36, %35 in 1 : vector<16x31xf32>, vector<16x1xf32> -> vector<16x32xf32>
    %38 = vector.broadcast %8 : vector<1x32xf32> to vector<16x32xf32>
    %39 = arith.mulf %37, %38 : vector<16x32xf32>
    %40 = arith.addf %34, %39 : vector<16x32xf32>
    %cst_22 = arith.constant 0.000000e+00 : f32
    %41 = vector.broadcast %cst_22 : f32 to vector<16x1xf32>
    %42 = vector.extract_strided_slice %26 {offsets = [0, 1], sizes = [16, 31], strides = [1, 1]} : vector<16x32xf32> to vector<16x31xf32>
    %43 = tpu.concatenate %42, %41 in 1 : vector<16x31xf32>, vector<16x1xf32> -> vector<16x32xf32>
    %44 = vector.broadcast %8 : vector<1x32xf32> to vector<16x32xf32>
    %45 = arith.mulf %43, %44 : vector<16x32xf32>
    %cst_23 = arith.constant 0.000000e+00 : f32
    %46 = vector.broadcast %cst_23 : f32 to vector<16x1xf32>
    %47 = vector.extract_strided_slice %26 {offsets = [0, 0], sizes = [16, 31], strides = [1, 1]} : vector<16x32xf32> to vector<16x31xf32>
    %48 = tpu.concatenate %46, %47 in 1 : vector<16x1xf32>, vector<16x31xf32> -> vector<16x32xf32>
    %49 = vector.broadcast %7 : vector<1x32xf32> to vector<16x32xf32>
    %50 = arith.mulf %48, %49 : vector<16x32xf32>
    %51 = arith.subf %45, %50 : vector<16x32xf32>
    %cst_24 = arith.constant 0.000000e+00 : f32
    %52 = vector.broadcast %cst_24 : f32 to vector<1x32xf32>
    %53 = vector.extract_strided_slice %40 {offsets = [1, 0], sizes = [15, 32], strides = [1, 1]} : vector<16x32xf32> to vector<15x32xf32>
    %54 = tpu.concatenate %53, %52 in 0 : vector<15x32xf32>, vector<1x32xf32> -> vector<16x32xf32>
    %cst_25 = arith.constant 0.000000e+00 : f32
    %55 = vector.broadcast %cst_25 : f32 to vector<1x32xf32>
    %56 = vector.extract_strided_slice %40 {offsets = [0, 0], sizes = [15, 32], strides = [1, 1]} : vector<16x32xf32> to vector<15x32xf32>
    %57 = tpu.concatenate %55, %56 in 0 : vector<1x32xf32>, vector<15x32xf32> -> vector<16x32xf32>
    %58 = arith.subf %54, %57 : vector<16x32xf32>
    %59 = arith.mulf %51, %51 : vector<16x32xf32>
    %60 = arith.mulf %58, %58 : vector<16x32xf32>
    %61 = arith.addf %59, %60 : vector<16x32xf32>
    %cst_26 = arith.constant 1.1920929E-7 : f32
    %62 = vector.broadcast %cst_26 : f32 to vector<16x32xf32>
    %63 = arith.addf %61, %62 : vector<16x32xf32>
    %64 = math.sqrt %63 : vector<16x32xf32>
    %65 = arith.mulf %64, %5 : vector<16x32xf32>
    %cst_27 = arith.constant dense<0.000000e+00> : vector<32xf32>
    %66 = vector.multi_reduction <add>, %65, %cst_27 [0] : vector<16x32xf32> to vector<32xf32>
    %67 = vector.shape_cast %66 : vector<32xf32> to vector<1x32xf32>
    %68 = vector.broadcast %67 : vector<1x32xf32> to vector<2x32xf32>
    %69 = arith.mulf %6, %68 : vector<2x32xf32>
    %cst_28 = arith.constant dense<0.000000e+00> : vector<2xf32>
    %70 = vector.multi_reduction <add>, %69, %cst_28 [1] : vector<2x32xf32> to vector<2xf32>
    %71 = vector.shape_cast %70 : vector<2xf32> to vector<2x1xf32>
    %72 = arith.mulf %16, %71 : vector<2x1xf32>
    %73 = vector.broadcast %72 : vector<2x1xf32> to vector<2x32xf32>
    %74 = arith.mulf %6, %73 : vector<2x32xf32>
    %cst_29 = arith.constant dense<0.000000e+00> : vector<32xf32>
    %75 = vector.multi_reduction <add>, %74, %cst_29 [0] : vector<2x32xf32> to vector<32xf32>
    %76 = vector.shape_cast %75 : vector<32xf32> to vector<1x32xf32>
    %77 = arith.mulf %76, %76 : vector<1x32xf32>
    %78 = vector.broadcast %77 : vector<1x32xf32> to vector<16x32xf32>
    %79 = arith.addf %61, %78 : vector<16x32xf32>
    %cst_30 = arith.constant 1.1920929E-7 : f32
    %80 = vector.broadcast %cst_30 : f32 to vector<16x32xf32>
    %81 = arith.addf %79, %80 : vector<16x32xf32>
    %82 = math.rsqrt %81 : vector<16x32xf32>
    %83 = arith.mulf %51, %82 : vector<16x32xf32>
    %84 = arith.mulf %58, %82 : vector<16x32xf32>
    %cst_31 = arith.constant 0.000000e+00 : f32
    %85 = vector.broadcast %cst_31 : f32 to vector<1x32xf32>
    %86 = vector.extract_strided_slice %1 {offsets = [0, 0], sizes = [15, 32], strides = [1, 1]} : vector<16x32xf32> to vector<15x32xf32>
    %87 = tpu.concatenate %85, %86 in 0 : vector<1x32xf32>, vector<15x32xf32> -> vector<16x32xf32>
    %cst_32 = arith.constant 2.000000e+00 : f32
    %88 = vector.broadcast %cst_32 : f32 to vector<16x32xf32>
    %89 = arith.mulf %88, %1 : vector<16x32xf32>
    %90 = arith.addf %87, %89 : vector<16x32xf32>
    %cst_33 = arith.constant 0.000000e+00 : f32
    %91 = vector.broadcast %cst_33 : f32 to vector<1x32xf32>
    %92 = vector.extract_strided_slice %1 {offsets = [1, 0], sizes = [15, 32], strides = [1, 1]} : vector<16x32xf32> to vector<15x32xf32>
    %93 = tpu.concatenate %92, %91 in 0 : vector<15x32xf32>, vector<1x32xf32> -> vector<16x32xf32>
    %94 = arith.addf %90, %93 : vector<16x32xf32>
    %cst_34 = arith.constant 0.000000e+00 : f32
    %95 = vector.broadcast %cst_34 : f32 to vector<16x1xf32>
    %96 = vector.extract_strided_slice %1 {offsets = [0, 0], sizes = [16, 31], strides = [1, 1]} : vector<16x32xf32> to vector<16x31xf32>
    %97 = tpu.concatenate %95, %96 in 1 : vector<16x1xf32>, vector<16x31xf32> -> vector<16x32xf32>
    %98 = vector.broadcast %7 : vector<1x32xf32> to vector<16x32xf32>
    %99 = arith.mulf %97, %98 : vector<16x32xf32>
    %cst_35 = arith.constant 2.000000e+00 : f32
    %100 = vector.broadcast %cst_35 : f32 to vector<16x32xf32>
    %101 = arith.mulf %100, %1 : vector<16x32xf32>
    %102 = arith.addf %99, %101 : vector<16x32xf32>
    %cst_36 = arith.constant 0.000000e+00 : f32
    %103 = vector.broadcast %cst_36 : f32 to vector<16x1xf32>
    %104 = vector.extract_strided_slice %1 {offsets = [0, 1], sizes = [16, 31], strides = [1, 1]} : vector<16x32xf32> to vector<16x31xf32>
    %105 = tpu.concatenate %104, %103 in 1 : vector<16x31xf32>, vector<16x1xf32> -> vector<16x32xf32>
    %106 = vector.broadcast %8 : vector<1x32xf32> to vector<16x32xf32>
    %107 = arith.mulf %105, %106 : vector<16x32xf32>
    %108 = arith.addf %102, %107 : vector<16x32xf32>
    %cst_37 = arith.constant 0.000000e+00 : f32
    %109 = vector.broadcast %cst_37 : f32 to vector<16x1xf32>
    %110 = vector.extract_strided_slice %94 {offsets = [0, 1], sizes = [16, 31], strides = [1, 1]} : vector<16x32xf32> to vector<16x31xf32>
    %111 = tpu.concatenate %110, %109 in 1 : vector<16x31xf32>, vector<16x1xf32> -> vector<16x32xf32>
    %112 = vector.broadcast %8 : vector<1x32xf32> to vector<16x32xf32>
    %113 = arith.mulf %111, %112 : vector<16x32xf32>
    %cst_38 = arith.constant 0.000000e+00 : f32
    %114 = vector.broadcast %cst_38 : f32 to vector<16x1xf32>
    %115 = vector.extract_strided_slice %94 {offsets = [0, 0], sizes = [16, 31], strides = [1, 1]} : vector<16x32xf32> to vector<16x31xf32>
    %116 = tpu.concatenate %114, %115 in 1 : vector<16x1xf32>, vector<16x31xf32> -> vector<16x32xf32>
    %117 = vector.broadcast %7 : vector<1x32xf32> to vector<16x32xf32>
    %118 = arith.mulf %116, %117 : vector<16x32xf32>
    %119 = arith.subf %113, %118 : vector<16x32xf32>
    %cst_39 = arith.constant 0.000000e+00 : f32
    %120 = vector.broadcast %cst_39 : f32 to vector<1x32xf32>
    %121 = vector.extract_strided_slice %108 {offsets = [1, 0], sizes = [15, 32], strides = [1, 1]} : vector<16x32xf32> to vector<15x32xf32>
    %122 = tpu.concatenate %121, %120 in 0 : vector<15x32xf32>, vector<1x32xf32> -> vector<16x32xf32>
    %cst_40 = arith.constant 0.000000e+00 : f32
    %123 = vector.broadcast %cst_40 : f32 to vector<1x32xf32>
    %124 = vector.extract_strided_slice %108 {offsets = [0, 0], sizes = [15, 32], strides = [1, 1]} : vector<16x32xf32> to vector<15x32xf32>
    %125 = tpu.concatenate %123, %124 in 0 : vector<1x32xf32>, vector<15x32xf32> -> vector<16x32xf32>
    %126 = arith.subf %122, %125 : vector<16x32xf32>
    %127 = arith.mulf %119, %119 : vector<16x32xf32>
    %128 = arith.mulf %126, %126 : vector<16x32xf32>
    %129 = arith.addf %127, %128 : vector<16x32xf32>
    %cst_41 = arith.constant 1.1920929E-7 : f32
    %130 = vector.broadcast %cst_41 : f32 to vector<16x32xf32>
    %131 = arith.addf %129, %130 : vector<16x32xf32>
    %132 = math.sqrt %131 : vector<16x32xf32>
    %133 = arith.mulf %132, %5 : vector<16x32xf32>
    %cst_42 = arith.constant dense<0.000000e+00> : vector<32xf32>
    %134 = vector.multi_reduction <add>, %133, %cst_42 [0] : vector<16x32xf32> to vector<32xf32>
    %135 = vector.shape_cast %134 : vector<32xf32> to vector<1x32xf32>
    %136 = vector.broadcast %135 : vector<1x32xf32> to vector<2x32xf32>
    %137 = arith.mulf %6, %136 : vector<2x32xf32>
    %cst_43 = arith.constant dense<0.000000e+00> : vector<2xf32>
    %138 = vector.multi_reduction <add>, %137, %cst_43 [1] : vector<2x32xf32> to vector<2xf32>
    %139 = vector.shape_cast %138 : vector<2xf32> to vector<2x1xf32>
    %140 = arith.mulf %16, %139 : vector<2x1xf32>
    %141 = vector.broadcast %140 : vector<2x1xf32> to vector<2x32xf32>
    %142 = arith.mulf %6, %141 : vector<2x32xf32>
    %cst_44 = arith.constant dense<0.000000e+00> : vector<32xf32>
    %143 = vector.multi_reduction <add>, %142, %cst_44 [0] : vector<2x32xf32> to vector<32xf32>
    %144 = vector.shape_cast %143 : vector<32xf32> to vector<1x32xf32>
    %145 = arith.mulf %144, %144 : vector<1x32xf32>
    %146 = vector.broadcast %145 : vector<1x32xf32> to vector<16x32xf32>
    %147 = arith.addf %129, %146 : vector<16x32xf32>
    %cst_45 = arith.constant 1.1920929E-7 : f32
    %148 = vector.broadcast %cst_45 : f32 to vector<16x32xf32>
    %149 = arith.addf %147, %148 : vector<16x32xf32>
    %150 = math.rsqrt %149 : vector<16x32xf32>
    %151 = arith.mulf %119, %150 : vector<16x32xf32>
    %152 = arith.mulf %126, %150 : vector<16x32xf32>
    %153 = arith.mulf %83, %151 : vector<16x32xf32>
    %154 = arith.mulf %84, %152 : vector<16x32xf32>
    %155 = arith.addf %153, %154 : vector<16x32xf32>
    %156 = arith.mulf %155, %155 : vector<16x32xf32>
    %cst_46 = arith.constant dense<0.000000e+00> : vector<32xf32>
    %157 = vector.multi_reduction <add>, %156, %cst_46 [0] : vector<16x32xf32> to vector<32xf32>
    %158 = vector.shape_cast %157 : vector<32xf32> to vector<1x32xf32>
    %c0_47 = arith.constant 0 : index
    %c0_48 = arith.constant 0 : index
    %c0_49 = arith.constant 0 : index
    %159 = vector.load %arg7[%c0_47, %c0_48, %c0_49] : memref<1x1x32xf32, #tpu.memory_space<vmem>>, vector<1x1x32xf32>
    %160 = vector.shape_cast %159 : vector<1x1x32xf32> to vector<1x32xf32>
    %161 = vector.shape_cast %158 : vector<1x32xf32> to vector<1x1x32xf32>
    tpu.vector_store %arg7[%c0_47, %c0_48, %c0_49], %161 {strides = array<i32>} : memref<1x1x32xf32, #tpu.memory_space<vmem>>, vector<1x1x32xf32>,
    return
  }
  func.func @transform_0(%arg0: i32) -> (i32, i32, i32) {
    %c0_i32 = arith.constant 0 : i32
    %c0_i32_0 = arith.constant 0 : i32
    %c0_i32_1 = arith.constant 0 : i32
    return %arg0, %c0_i32, %c0_i32_0 : i32, i32, i32
  }
  func.func @transform_1(%arg0: i32) -> (i32, i32, i32) {
    %c0_i32 = arith.constant 0 : i32
    %c0_i32_0 = arith.constant 0 : i32
    %c0_i32_1 = arith.constant 0 : i32
    return %arg0, %c0_i32, %c0_i32_0 : i32, i32, i32
  }
  func.func @transform_2(%arg0: i32) -> (i32, i32, i32) {
    %c0_i32 = arith.constant 0 : i32
    %c0_i32_0 = arith.constant 0 : i32
    %c0_i32_1 = arith.constant 0 : i32
    return %arg0, %c0_i32, %c0_i32_0 : i32, i32, i32
  }
  func.func @transform_3(%arg0: i32) -> (i32, i32) {
    %c0_i32 = arith.constant 0 : i32
    %c0_i32_0 = arith.constant 0 : i32
    %c0_i32_1 = arith.constant 0 : i32
    return %c0_i32, %c0_i32_0 : i32, i32
  }
  func.func @transform_4(%arg0: i32) -> (i32, i32) {
    %c0_i32 = arith.constant 0 : i32
    %c0_i32_0 = arith.constant 0 : i32
    %c0_i32_1 = arith.constant 0 : i32
    return %c0_i32, %c0_i32_0 : i32, i32
  }
  func.func @transform_5(%arg0: i32) -> (i32, i32) {
    %c0_i32 = arith.constant 0 : i32
    %c0_i32_0 = arith.constant 0 : i32
    %c0_i32_1 = arith.constant 0 : i32
    return %c0_i32, %c0_i32_0 : i32, i32
  }
  func.func @transform_6(%arg0: i32) -> (i32, i32, i32) {
    %c0_i32 = arith.constant 0 : i32
    %c0_i32_0 = arith.constant 0 : i32
    %c0_i32_1 = arith.constant 0 : i32
    return %arg0, %c0_i32, %c0_i32_0 : i32, i32, i32
  }
}

</mosaic_0001>

<bundles_post_ra>
// kernel: tpu_custom_call.1
= control target key start
LH: loop header
LB: loop body
LE: loop exit
PB: predicated region body
PF: predicated region fallthrough
CT: control target
= control target key end

     0   :  { %11 = vsyncpa [#allocation3], 0  ;;  %s847_s0 = inlined_call_operand.hbm [shape: f32[1,16,32], index: 0, kind: input, shape index: {}]   ;;  %s848_s1 = inlined_call_operand.hbm [shape: f32[1,16,32], index: 1, kind: input, shape index: {}]   ;;  %s849_s2 = inlined_call_operand.hbm [shape: f32[1,16,32], index: 2, kind: input, shape index: {}]   ;;  %s850_s3 = inlined_call_operand.vmem [shape: f32[2,32], index: 3, kind: input, shape index: {}]   ;;  %s851_s4 = inlined_call_operand.vmem [shape: f32[1,32], index: 4, kind: input, shape index: {}]   ;;  %s852_s5 = inlined_call_operand.vmem [shape: f32[1,32], index: 5, kind: input, shape index: {}]   ;;  %s853_s6 = inlined_call_operand.hbm [shape: f32[1,1,32], index: 6, kind: output, shape index: {}]  }
   0x1   :  { %12 = vsyncpa [#allocation6], 0 }
   0x2   :  { %13 = vsyncpa [#allocation4], 0  ;;  %s31_s23 = sshll.u32 %s848_s1, 4  ;;  %s625_s24 = smov [#allocation5]   ;;  %s32_s23 = int_to_ptr.hbm [resolvable:$true] %s31_s23 }
   0x3   :  { %s33_s25 = sshll.u32 %s625_s24, 4  ;;  %s18_s28 = sshll.u32 %s847_s0, 4  ;;  %s34_s25 = int_to_ptr.vmem [resolvable:$true] %s33_s25  ;;  %s19_s28 = int_to_ptr.hbm [resolvable:$true] %s18_s28 }
   0x4   :  { %s626_s29 = smov 128   ;;  %s627_s30 = smov 8  }
   0x5   :  { %39 = dma.hbm_to_vmem [thread:$0]  %s32_s23, 256, %s34_s25, [#allocation6], %s626_s29, %s626_s29, %s627_s30  }
   0x6   :  { %s628_s7 = smov [#allocation2]   ;;  %s44_s11 = sshll.u32 %s849_s2, 4  ;;  %s45_s11 = int_to_ptr.hbm [resolvable:$true] %s44_s11 }
   0x7   :  { %s20_s8 = sshll.u32 %s628_s7, 4  ;;  %s629_s1 = smov [#allocation7]   ;;  %s21_s8 = int_to_ptr.vmem [resolvable:$true] %s20_s8 }
   0x8   :  { %26 = dma.hbm_to_vmem [thread:$0]  %s19_s28, 256, %s21_s8, [#allocation3], %s626_s29, %s626_s29, %s627_s30  }
   0x9   :  { %s46_s12 = sshll.u32 %s629_s1, 4  ;;  %s47_s12 = int_to_ptr.vmem [resolvable:$true] %s46_s12 }
   0xa   :  { %52 = dma.hbm_to_vmem [thread:$0]  %s45_s11, 256, %s47_s12, [#allocation6], %s626_s29, %s626_s29, %s627_s30  }
   0xb   :  { %619 = dma.done.wait [#allocation3], 256  }
   0xc   :  { %620 = vsyncadd [#allocation3], 4294967040 }
   0xd   :  { %621 = dma.done.wait [#allocation6], 512  }
   0xe   :  { %622 = vsyncadd [#allocation6], 4294966784  ;;  %v73_v0 = vld [vmem:[#allocation5] sm:$0xff]  ;;  %v71_v1 = vld [vmem:[#allocation2] sm:$0xff]  ;;  %s630_s0 = smov 1   ;;  %s631_s13 = smov 127  }
   0xf   :  { %132 = vrot.lane.b32.xlu0 %v73_v0, %s630_s0  ;;  %309 = vrot.lane.b32.xlu1 %v71_v1, %s630_s0  ;;  %v113_v2 = vrot.slane %v73_v0, 7  ;;  %v74_v3 = vld [vmem:[#allocation5 + $0x8] sm:$0xff]  ;;  %v72_v4 = vld [vmem:[#allocation2 + $0x8] sm:$0xff]  ;;  %vm112_vm0 = vcmask 1040384   ;;  %v119_v5 = vmul.f32 2.0, %v73_v0  ;;  %v124_v8 = vrot.slane %v73_v0, 1 }
  0x10   :  { %148 = vrot.lane.b32.xlu2 %v73_v0, %s631_s13  ;;  %v125_v6 = vrot.slane %v74_v3, 1  ;;  %v114_v9 = vrot.slane %v74_v3, 7  ;;  %vm123_vm1 = vcmask 1046528   ;;  %v120_v11 = vmul.f32 2.0, %v74_v3  ;;  %v707_v36 = vld [vmem:[%s851_s4] ss:$0 sm:$0xff] }
  0x11   :  { %v118_v7 = vsel %vm112_vm0, 0.0, %v113_v2  ;;  %v291_v17 = vrot.slane %v71_v1, 7  ;;  %v292_v18 = vrot.slane %v72_v4, 7  ;;  %v690_v20 = vmul.f32 2.0, %v71_v1  ;;  %v713_v39 = vld [vmem:[%s852_s5] ss:$0 sm:$0xff] }
  0x12   :  { %v121_v10 = vadd.f32 %v119_v5, %v118_v7  ;;  %v126_v12 = vsel %vm123_vm1, %v124_v8, %v125_v6  ;;  %v115_v13 = vsel %vm112_vm0, %v113_v2, %v114_v9  ;;  %v129_v16 = vsel %vm123_vm1, %v125_v6, 0.0  ;;  %v721_v48 = vld [vmem:[#allocation7] sm:$0xff]  ;;  %v723_v49 = vld [vmem:[#allocation7 + $0x8] sm:$0xff]  ;;  %s484_s20 = sshll.u32 %s853_s6, 4  ;;  %s485_s20 = int_to_ptr.hbm [resolvable:$true] %s484_s20 }
  0x13   :  { %v122_v15 = vadd.f32 %v120_v11, %v115_v13  ;;  %v298_v21 = vmul.f32 2.0, %v72_v4  ;;  %v296_v22 = vsel %vm112_vm0, 0.0, %v291_v17  ;;  %v301_v23 = vrot.slane %v71_v1, 1 }
  0x14   :  { %v130_v14 = vadd.f32 %v126_v12, %v121_v10  ;;  %v302_v24 = vrot.slane %v72_v4, 1  ;;  %v293_v25 = vsel %vm112_vm0, %v291_v17, %v292_v18  ;;  %v299_v26 = vadd.f32 %v690_v20, %v296_v22 }
  0x15   :  { %v131_v19 = vadd.f32 %v129_v16, %v122_v15  ;;  %v300_v27 = vadd.f32 %v298_v21, %v293_v25  ;;  %vm138_vm2 = vcmask 7168   ;;  %vm154_vm3 = vcmask 252928  }
  0x16   :  { %v303_v28 = vsel %vm123_vm1, %v301_v23, %v302_v24  ;;  %v306_v29 = vsel %vm123_vm1, %v302_v24, 0.0  ;;  %vm80_vm4 = vcmask 261120   ;;  %vm91_vm5 = vcmask 254976  }
  0x17   :  { %134 = vrot.lane.b32.xlu0 %v74_v3, %s630_s0  ;;  %311 = vrot.lane.b32.xlu1 %v72_v4, %s630_s0  ;;  %v307_v30 = vadd.f32 %v303_v28, %v299_v26  ;;  %v308_v31 = vadd.f32 %v306_v29, %v300_v27  ;;  %v81_v54 = vsel %vm80_vm4, %v721_v48, 0.0  ;;  %v82_v55 = vsel %vm80_vm4, %v723_v49, 0.0 }
  0x18   :  { %150 = vrot.lane.b32.xlu2 %v74_v3, %s631_s13  ;;  %v83_v57 = vadd.f32 %v82_v55, %v81_v54 }
  0x1a   :  { %v84_v61 = vrot.slane %v83_v57, 4 }
  0x1f   :  { %321 = vrot.lane.b32.xlu0 %v71_v1, %s631_s13  ;;  %323 = vrot.lane.b32.xlu1 %v72_v4, %s631_s13  ;;  %v85_v4 = vadd.f32 %v84_v61, %v83_v57 }
  0x20   :  { %166 = vrot.lane.b32.xlu2 %v130_v14, %s631_s13 }
  0x21   :  { %v86_v10 = vrot.slane %v85_v4, 2 }
  0x23   :  { %v87_v15 = vadd.f32 %v86_v10, %v85_v4 }
  0x25   :  { %v88_v23 = vrot.slane %v87_v15, 1 }
  0x27   :  { %168 = vrot.lane.b32.xlu0 %v131_v19, %s631_s13  ;;  %176 = vrot.lane.b32.xlu1 %v130_v14, %s630_s0 }
  0x28   :  { %178 = vrot.lane.b32.xlu2 %v131_v19, %s630_s0 }
  0x2f   :  { %335 = vrot.lane.b32.xlu0 %v307_v30, %s631_s13  ;;  %337 = vrot.lane.b32.xlu1 %v308_v31, %s631_s13 }
  0x30   :  { %345 = vrot.lane.b32.xlu2 %v307_v30, %s630_s0 }
  0x37   :  { %347 = vrot.lane.b32.xlu0 %v308_v31, %s630_s0 }
  0x6a   :  { %v149_v32 = vpop.permute.xlu2 %148 }
  0x6b   :  { %v155_v42 = vsel %vm154_vm3, %v149_v32, 0.0 }
  0x6c   :  { %v160_v50 = vmul.f32 %v713_v39, %v155_v42 }
  0x72   :  { %v151_v33 = vpop.permute.xlu2 %150 }
  0x73   :  { %v156_v41 = vsel %vm154_vm3, %v151_v33, 0.0 }
  0x74   :  { %v161_v46 = vmul.f32 %v713_v39, %v156_v41  ;;  %v89_v41 = vadd.f32 %v88_v23, %v87_v15 }
  0x7a   :  { %v167_v38 = vpop.permute.xlu2 %166 }
  0x7b   :  { %v172_v18 = vsel %vm154_vm3, %v167_v38, 0.0 }
  0x7c   :  { %v174_v28 = vmul.f32 %v713_v39, %v172_v18 }
  0x81   :  { %v133_v34 = vpop.permute.xlu0 %132  ;;  %v310_v35 = vpop.permute.xlu1 %309 }
  0x82   :  { %v139_v37 = vsel %vm138_vm2, 0.0, %v133_v34  ;;  %v315_v56 = vsel %vm138_vm2, 0.0, %v310_v35  ;;  %v179_v60 = vpop.permute.xlu2 %178  ;;  %v757_v35 = vld [vmem:[%s850_s3] sm:$0x3]  ;;  %s632_s3 = smov [#allocation8]  }
  0x83   :  { %v144_v40 = vmul.f32 %v707_v36, %v139_v37  ;;  %v317_v63 = vmul.f32 %v707_v36, %v315_v56  ;;  %v183_v14 = vsel %vm138_vm2, 0.0, %v179_v60  ;;  %s482_s17 = sshll.u32 %s632_s3, 4  ;;  %s483_s17 = int_to_ptr.vmem [resolvable:$true] %s482_s17 }
  0x84   :  { %v185_v24 = vmul.f32 %v707_v36, %v183_v14 }
  0x85   :  { %v146_v51 = vadd.f32 %v144_v40, %v119_v5  ;;  %v319_v12 = vadd.f32 %v317_v63, %v690_v20 }
  0x87   :  { %v162_v62 = vadd.f32 %v160_v50, %v146_v51 }
  0x89   :  { %v135_v43 = vpop.permute.xlu0 %134  ;;  %v312_v44 = vpop.permute.xlu1 %311  ;;  %v190_v13 = vrot.slane %v162_v62, 1 }
  0x8a   :  { %v140_v45 = vsel %vm138_vm2, 0.0, %v135_v43  ;;  %v316_v53 = vsel %vm138_vm2, 0.0, %v312_v44  ;;  %v346_v34 = vpop.permute.xlu2 %345 }
  0x8b   :  { %v145_v47 = vmul.f32 %v707_v36, %v140_v45  ;;  %v318_v59 = vmul.f32 %v707_v36, %v316_v53  ;;  %v351_v44 = vsel %vm138_vm2, 0.0, %v346_v34  ;;  %v90_v45 = vmul.f32 %v89_v41, %v757_v35 }
  0x8c   :  { %v353_v56 = vmul.f32 %v707_v36, %v351_v44 }
  0x8d   :  { %v147_v52 = vadd.f32 %v145_v47, %v120_v11  ;;  %v320_v8 = vadd.f32 %v318_v59, %v298_v21  ;;  %v196_v11 = vrot.slane %v162_v62, 7  ;;  %v92_v54 = vsel %vm91_vm5, %v90_v45, 0.0 }
  0x8e   :  { %93 = vadd.xlane.f32.xlu1 %v92_v54 }
  0x8f   :  { %v163_v58 = vadd.f32 %v161_v46, %v147_v52  ;;  %v201_v20 = vsel %vm112_vm0, 0.0, %v196_v11 }
  0x91   :  { %v322_v0 = vpop.permute.xlu0 %321  ;;  %v324_v1 = vpop.permute.xlu1 %323  ;;  %v191_v5 = vrot.slane %v163_v58, 1  ;;  %v197_v6 = vrot.slane %v163_v58, 7 }
  0x92   :  { %v327_v2 = vsel %vm154_vm3, %v322_v0, 0.0  ;;  %v328_v3 = vsel %vm154_vm3, %v324_v1, 0.0 }
  0x93   :  { %v329_v7 = vmul.f32 %v713_v39, %v327_v2  ;;  %v330_v9 = vmul.f32 %v713_v39, %v328_v3  ;;  %v195_v16 = vsel %vm123_vm1, %v191_v5, 0.0  ;;  %v198_v17 = vsel %vm112_vm0, %v196_v11, %v197_v6 }
  0x94   :  { %v192_v22 = vsel %vm123_vm1, %v190_v13, %v191_v5  ;;  %v746_v27 = vsub.f32 %v195_v16, %v198_v17 }
  0x95   :  { %v331_v19 = vadd.f32 %v329_v7, %v319_v12  ;;  %v332_v21 = vadd.f32 %v330_v9, %v320_v8  ;;  %v751_v32 = vsub.f32 %v192_v22, %v201_v20 }
  0x96   :  { %v207_v46 = vmul.f32 %v746_v27, %v746_v27 }
  0x97   :  { %v359_v30 = vrot.slane %v331_v19, 1  ;;  %v365_v37 = vrot.slane %v331_v19, 7  ;;  %v360_v38 = vrot.slane %v332_v21, 1  ;;  %v206_v50 = vmul.f32 %v751_v32, %v751_v32 }
  0x98   :  { %v366_v0 = vrot.slane %v332_v21, 7 }
  0x99   :  { %v169_v25 = vpop.permute.xlu0 %168  ;;  %v177_v26 = vpop.permute.xlu1 %176  ;;  %v370_v51 = vsel %vm112_vm0, 0.0, %v365_v37  ;;  %v361_v52 = vsel %vm123_vm1, %v359_v30, %v360_v38  ;;  %v364_v6 = vsel %vm123_vm1, %v360_v38, 0.0 }
  0x9a   :  { %v173_v29 = vsel %vm154_vm3, %v169_v25, 0.0  ;;  %v182_v33 = vsel %vm138_vm2, 0.0, %v177_v26  ;;  %v783_v60 = vsub.f32 %v361_v52, %v370_v51  ;;  %v367_v7 = vsel %vm112_vm0, %v365_v37, %v366_v0 }
  0x9b   :  { %v175_v31 = vmul.f32 %v713_v39, %v173_v29  ;;  %v184_v40 = vmul.f32 %v707_v36, %v182_v33  ;;  %v801_v13 = vsub.f32 %v364_v6, %v367_v7 }
  0x9c   :  { %v375_v4 = vmul.f32 %v783_v60, %v783_v60 }
  0x9d   :  { %v760_v42 = vsub.f32 %v175_v31, %v185_v24  ;;  %v762_v43 = vsub.f32 %v174_v28, %v184_v40  ;;  %v376_v21 = vmul.f32 %v801_v13, %v801_v13 }
  0x9f   :  { %v205_v47 = vmul.f32 %v760_v42, %v760_v42  ;;  %v204_v53 = vmul.f32 %v762_v43, %v762_v43 }
  0xa1   :  { %v777_v55 = vadd.f32 %v207_v46, %v205_v47  ;;  %v336_v57 = vpop.permute.xlu0 %335  ;;  %v780_v58 = vadd.f32 %v206_v50, %v204_v53  ;;  %v338_v63 = vpop.permute.xlu1 %337 }
  0xa2   :  { %v341_v59 = vsel %vm154_vm3, %v336_v57, 0.0  ;;  %v342_v3 = vsel %vm154_vm3, %v338_v63, 0.0 }
  0xa3   :  { %v211_v61 = vadd.f32 1.1920929e-07, %v777_v55  ;;  %v343_v62 = vmul.f32 %v713_v39, %v341_v59  ;;  %v210_v1 = vadd.f32 1.1920929e-07, %v780_v58  ;;  %v344_v10 = vmul.f32 %v713_v39, %v342_v3 }
  0xa5   :  { %505 = vrsqrt.f32 %v211_v61  ;;  %v788_v2 = vsub.f32 %v343_v62, %v353_v56  ;;  %vm231_vm6 = vcmp.eq.f32.partialorder %v211_v61, inf  ;;  %vm233_vm7 = vcmp.eq.f32.partialorder %v211_v61, 0.0 }
  0xa6   :  { %507 = vrsqrt.f32 %v210_v1  ;;  %v234_v40 = vand.u32 2147483648, %v211_v61  ;;  %vm219_vm8 = vcmp.eq.f32.partialorder %v210_v1, inf  ;;  %v222_v41 = vand.u32 2147483648, %v210_v1 }
  0xa7   :  { %v373_v5 = vmul.f32 %v788_v2, %v788_v2  ;;  %vm221_vm9 = vcmp.eq.f32.partialorder %v210_v1, 0.0 }
  0xa9   :  { %v797_v8 = vadd.f32 %v375_v4, %v373_v5  ;;  %v348_v9 = vpop.permute.xlu0 %347 }
  0xaa   :  { %v352_v11 = vsel %vm138_vm2, 0.0, %v348_v9 }
  0xab   :  { %v506_v12 = vpop.eup %505  ;;  %v379_v14 = vadd.f32 1.1920929e-07, %v797_v8  ;;  %v354_v15 = vmul.f32 %v707_v36, %v352_v11 }
  0xac   :  { %v508_v16 = vpop.eup %507  ;;  %v225_v17 = vmul.f32 %v506_v12, %v211_v61 }
  0xad   :  { %509 = vrsqrt.f32 %v379_v14  ;;  %v805_v18 = vsub.f32 %v344_v10, %v354_v15  ;;  %v213_v19 = vmul.f32 %v508_v16, %v210_v1  ;;  %vm388_vm10 = vcmp.eq.f32.partialorder %v379_v14, inf }
  0xae   :  { %v226_v22 = vmul.f32 %v506_v12, %v225_v17  ;;  %v391_v7 = vand.u32 2147483648, %v379_v14  ;;  %vm390_vm11 = vcmp.eq.f32.partialorder %v379_v14, 0.0 }
  0xaf   :  { %v374_v39 = vmul.f32 %v805_v18, %v805_v18  ;;  %v214_v23 = vmul.f32 %v508_v16, %v213_v19 }
  0xb0   :  { %v227_v24 = vmul.f32 0.5, %v226_v22 }
  0xb1   :  { %v811_v25 = vadd.f32 %v376_v21, %v374_v39  ;;  %v215_v26 = vmul.f32 0.5, %v214_v23 }
  0xb2   :  { %v228_v20 = vsub.f32 1.5, %v227_v24 }
  0xb3   :  { %v510_v36 = vpop.eup %509  ;;  %v380_v28 = vadd.f32 1.1920929e-07, %v811_v25  ;;  %v216_v29 = vsub.f32 1.5, %v215_v26 }
  0xb4   :  { %v229_v30 = vmul.f32 %v506_v12, %v228_v20  ;;  %v382_v31 = vmul.f32 %v510_v36, %v379_v14 }
  0xb5   :  { %511 = vrsqrt.f32 %v380_v28  ;;  %v217_v33 = vmul.f32 %v508_v16, %v216_v29  ;;  %vm400_vm12 = vcmp.eq.f32.partialorder %v380_v28, inf  ;;  %v403_v16 = vand.u32 2147483648, %v380_v28 }
  0xb6   :  { %v230_v34 = vmul.f32 %v229_v30, %v211_v61  ;;  %v383_v37 = vmul.f32 %v510_v36, %v382_v31  ;;  %vm402_vm13 = vcmp.eq.f32.partialorder %v380_v28, 0.0 }
  0xb7   :  { %v218_v38 = vmul.f32 %v217_v33, %v210_v1 }
  0xb8   :  { %v232_v44 = vsel %vm231_vm6, %v211_v61, %v230_v34  ;;  %v384_v45 = vmul.f32 0.5, %v383_v37 }
  0xb9   :  { %v220_v46 = vsel %vm219_vm8, %v210_v1, %v218_v38  ;;  %v235_v47 = vsel %vm233_vm7, %v234_v40, %v232_v44 }
  0xba   :  { %v223_v50 = vsel %vm221_vm9, %v222_v41, %v220_v46  ;;  %v237_v51 = vmul.f32 %v235_v47, %v723_v49  ;;  %v385_v52 = vsub.f32 1.5, %v384_v45 }
  0xbb   :  { %v512_v53 = vpop.eup %511  ;;  %v236_v54 = vmul.f32 %v223_v50, %v721_v48 }
  0xbc   :  { %v239_v56 = vsel %vm80_vm4, %v237_v51, 0.0  ;;  %v386_v57 = vmul.f32 %v510_v36, %v385_v52  ;;  %v394_v59 = vmul.f32 %v512_v53, %v380_v28 }
  0xbd   :  { %v238_v62 = vsel %vm80_vm4, %v236_v54, 0.0 }
  0xbe   :  { %v240_v63 = vadd.f32 %v239_v56, %v238_v62  ;;  %v387_v0 = vmul.f32 %v386_v57, %v379_v14  ;;  %v395_v61 = vmul.f32 %v512_v53, %v394_v59 }
  0xc0   :  { %v241_v3 = vrot.slane %v240_v63, 4  ;;  %v396_v4 = vmul.f32 0.5, %v395_v61  ;;  %v389_v5 = vsel %vm388_vm10, %v379_v14, %v387_v0 }
  0xc1   :  { %v392_v11 = vsel %vm390_vm11, %v391_v7, %v389_v5 }
  0xc2   :  { %v242_v1 = vadd.f32 %v241_v3, %v240_v63  ;;  %v397_v6 = vsub.f32 1.5, %v396_v4  ;;  %v405_v22 = vmul.f32 %v392_v11, %v721_v48 }
  0xc4   :  { %v243_v9 = vrot.slane %v242_v1, 2  ;;  %v398_v10 = vmul.f32 %v512_v53, %v397_v6  ;;  %v407_v26 = vsel %vm80_vm4, %v405_v22, 0.0 }
  0xc6   :  { %v244_v12 = vadd.f32 %v243_v9, %v242_v1  ;;  %v399_v15 = vmul.f32 %v398_v10, %v380_v28 }
  0xc8   :  { %v245_v17 = vrot.slane %v244_v12, 1  ;;  %v401_v19 = vsel %vm400_vm12, %v380_v28, %v399_v15 }
  0xc9   :  { %v404_v21 = vsel %vm402_vm13, %v403_v16, %v401_v19 }
  0xca   :  { %v246_v39 = vadd.f32 %v245_v17, %v244_v12  ;;  %v406_v23 = vmul.f32 %v404_v21, %v723_v49 }
  0xcc   :  { %v247_v24 = vmul.f32 %v246_v39, %v757_v35  ;;  %v408_v14 = vsel %vm80_vm4, %v406_v23, 0.0 }
  0xcd   :  { %v409_v20 = vadd.f32 %v408_v14, %v407_v26 }
  0xce   :  { %v248_v36 = vsel %vm91_vm5, %v247_v24, 0.0 }
  0xcf   :  { %249 = vadd.xlane.f32.xlu2 %v248_v36  ;;  %v410_v29 = vrot.slane %v409_v20, 4 }
  0xd1   :  { %v411_v30 = vadd.f32 %v410_v29, %v409_v20 }
  0xd3   :  { %v412_v31 = vrot.slane %v411_v30, 2 }
  0xd5   :  { %v413_v28 = vadd.f32 %v412_v31, %v411_v30 }
  0xd7   :  { %v414_v33 = vrot.slane %v413_v28, 1 }
  0xd9   :  { %v415_v48 = vadd.f32 %v414_v33, %v413_v28 }
  0xdb   :  { %v416_v34 = vmul.f32 %v415_v48, %v757_v35 }
  0xdd   :  { %v417_v49 = vsel %vm91_vm5, %v416_v34, 0.0 }
  0xde   :  { %418 = vadd.xlane.f32.xlu0 %v417_v49 }
 0x101   :  { %v94_v37 = vpop.xlane.xlu1 %93 }
 0x102   :  { %513 = vrcp.f32 %v94_v37  ;;  %vm100_vm14 = vweird.f32 %v94_v37  ;;  %v106_v45 = vand.u32 2147483648, %v94_v37  ;;  %v104_v47 = vand.u32 2147483647, %v94_v37 }
 0x104   :  { %v107_v50 = vor.u32 1.1754944e-38, %v106_v45  ;;  %vm105_vm1 = vcmp.eq.f32.partialorder %v104_v47, 8.507059e+37 }
 0x108   :  { %v514_v38 = vpop.eup %513 }
 0x109   :  { %v96_v40 = vmul.f32 %v514_v38, %v94_v37  ;;  %vm101_vm15 = vweird.f32 %v514_v38 }
 0x10a   :  { %vm102_vm0 = vmor %vm100_vm14, %vm101_vm15  ;;  %vm475_vm15 = vcmask 253952  }
 0x10b   :  { %v97_v41 = vsub.f32 1.0, %v96_v40 }
 0x10d   :  { %v98_v44 = vmul.f32 %v514_v38, %v97_v41 }
 0x10f   :  { %v99_v46 = vadd.f32 %v514_v38, %v98_v44 }
 0x111   :  { %v103_v51 = vsel %vm102_vm0, %v514_v38, %v99_v46 }
 0x112   :  { %v108_v52 = vsel %vm105_vm1, %v107_v50, %v103_v51 }
 0x142   :  { %v250_v53 = vpop.xlane.xlu2 %249 }
 0x143   :  { %v251_v54 = vmul.f32 %v250_v53, %v108_v52 }
 0x145   :  { %v252_v56 = vmul.f32 %v251_v54, %v757_v35 }
 0x147   :  { %v253_v57 = vsel %vm91_vm5, %v252_v56, 0.0 }
 0x148   :  { %v254_v59 = vrot.slane %v253_v57, 4 }
 0x14a   :  { %v255_v62 = vadd.f32 %v254_v59, %v253_v57 }
 0x14c   :  { %v256_v63 = vrot.slane %v255_v62, 2 }
 0x14e   :  { %v257_v0 = vadd.f32 %v256_v63, %v255_v62 }
 0x150   :  { %v258_v61 = vrot.slane %v257_v0, 1 }
 0x151   :  { %v419_v3 = vpop.xlane.xlu0 %418 }
 0x152   :  { %v259_v4 = vadd.f32 %v258_v61, %v257_v0  ;;  %v420_v1 = vmul.f32 %v419_v3, %v108_v52 }
 0x154   :  { %v260_v5 = vmul.f32 %v259_v4, %v259_v4  ;;  %v421_v6 = vmul.f32 %v420_v1, %v757_v35 }
 0x156   :  { %v261_v7 = vadd.f32 %v260_v5, %v780_v58  ;;  %v262_v9 = vadd.f32 %v260_v5, %v777_v55  ;;  %v422_v10 = vsel %vm91_vm5, %v421_v6, 0.0 }
 0x157   :  { %v423_v11 = vrot.slane %v422_v10, 4 }
 0x158   :  { %v263_v12 = vadd.f32 1.1920929e-07, %v261_v7  ;;  %v264_v15 = vadd.f32 1.1920929e-07, %v262_v9 }
 0x159   :  { %v424_v16 = vadd.f32 %v423_v11, %v422_v10 }
 0x15a   :  { %515 = vrsqrt.f32 %v263_v12  ;;  %vm271_vm3 = vweird.f32 %v263_v12  ;;  %vm281_vm8 = vweird.f32 %v264_v15 }
 0x15b   :  { %v425_v17 = vrot.slane %v424_v16, 2  ;;  %517 = vrsqrt.f32 %v264_v15 }
 0x15d   :  { %v426_v19 = vadd.f32 %v425_v17, %v424_v16 }
 0x15f   :  { %v427_v22 = vrot.slane %v426_v19, 1 }
 0x160   :  { %v516_v21 = vpop.eup %515 }
 0x161   :  { %v428_v39 = vadd.f32 %v427_v22, %v426_v19  ;;  %v518_v23 = vpop.eup %517  ;;  %v266_v24 = vmul.f32 %v516_v21, %v263_v12  ;;  %vm272_vm2 = vweird.f32 %v516_v21 }
 0x162   :  { %v276_v26 = vmul.f32 %v518_v23, %v264_v15  ;;  %vm282_vm5 = vweird.f32 %v518_v23  ;;  %vm273_vm6 = vmor %vm271_vm3, %vm272_vm2 }
 0x163   :  { %v429_v35 = vmul.f32 %v428_v39, %v428_v39  ;;  %v267_v14 = vmul.f32 %v516_v21, %v266_v24  ;;  %vm283_vm10 = vmor %vm281_vm8, %vm282_vm5 }
 0x164   :  { %v277_v29 = vmul.f32 %v518_v23, %v276_v26 }
 0x165   :  { %v430_v58 = vadd.f32 %v429_v35, %v797_v8  ;;  %v431_v55 = vadd.f32 %v429_v35, %v811_v25  ;;  %v268_v30 = vmul.f32 0.5, %v267_v14 }
 0x166   :  { %v278_v31 = vmul.f32 0.5, %v277_v29 }
 0x167   :  { %v432_v20 = vadd.f32 1.1920929e-07, %v430_v58  ;;  %v433_v36 = vadd.f32 1.1920929e-07, %v431_v55  ;;  %v269_v33 = vsub.f32 1.5, %v268_v30 }
 0x168   :  { %v279_v49 = vsub.f32 1.5, %v278_v31 }
 0x169   :  { %519 = vrsqrt.f32 %v432_v20  ;;  %v270_v40 = vmul.f32 %v516_v21, %v269_v33  ;;  %vm440_vm11 = vweird.f32 %v432_v20  ;;  %vm450_vm13 = vweird.f32 %v433_v36 }
 0x16a   :  { %521 = vrsqrt.f32 %v433_v36  ;;  %v280_v25 = vmul.f32 %v518_v23, %v279_v49 }
 0x16b   :  { %v274_v46 = vsel %vm273_vm6, %v516_v21, %v270_v40 }
 0x16c   :  { %v284_v51 = vsel %vm283_vm10, %v518_v23, %v280_v25  ;;  %v285_v53 = vmul.f32 %v274_v46, %v762_v43  ;;  %v287_v56 = vmul.f32 %v274_v46, %v751_v32 }
 0x16d   :  { %v286_v63 = vmul.f32 %v284_v51, %v760_v42  ;;  %v288_v0 = vmul.f32 %v284_v51, %v746_v27 }
 0x16f   :  { %v520_v28 = vpop.eup %519 }
 0x170   :  { %v522_v48 = vpop.eup %521  ;;  %v435_v34 = vmul.f32 %v520_v28, %v432_v20  ;;  %vm441_vm7 = vweird.f32 %v520_v28 }
 0x171   :  { %v445_v37 = vmul.f32 %v522_v48, %v433_v36  ;;  %vm451_vm9 = vweird.f32 %v522_v48  ;;  %vm442_vm12 = vmor %vm440_vm11, %vm441_vm7 }
 0x172   :  { %v436_v38 = vmul.f32 %v520_v28, %v435_v34  ;;  %vm452_vm14 = vmor %vm450_vm13, %vm451_vm9 }
 0x173   :  { %v446_v8 = vmul.f32 %v522_v48, %v445_v37 }
 0x174   :  { %v437_v41 = vmul.f32 0.5, %v436_v38 }
 0x175   :  { %v447_v44 = vmul.f32 0.5, %v446_v8 }
 0x176   :  { %v438_v45 = vsub.f32 1.5, %v437_v41 }
 0x177   :  { %v448_v47 = vsub.f32 1.5, %v447_v44 }
 0x178   :  { %v439_v50 = vmul.f32 %v520_v28, %v438_v45 }
 0x179   :  { %v449_v52 = vmul.f32 %v522_v48, %v448_v47 }
 0x17a   :  { %v443_v54 = vsel %vm442_vm12, %v520_v28, %v439_v50 }
 0x17b   :  { %v453_v57 = vsel %vm452_vm14, %v522_v48, %v449_v52  ;;  %v454_v59 = vmul.f32 %v443_v54, %v788_v2  ;;  %v456_v62 = vmul.f32 %v443_v54, %v783_v60 }
 0x17c   :  { %v455_v61 = vmul.f32 %v453_v57, %v805_v18  ;;  %v457_v3 = vmul.f32 %v453_v57, %v801_v13 }
 0x17d   :  { %v458_v4 = vmul.f32 %v454_v59, %v285_v53  ;;  %v460_v1 = vmul.f32 %v456_v62, %v287_v56 }
 0x17e   :  { %v459_v43 = vmul.f32 %v455_v61, %v286_v63  ;;  %v461_v5 = vmul.f32 %v457_v3, %v288_v0 }
 0x17f   :  { %v462_v6 = vadd.f32 %v460_v1, %v458_v4 }
 0x180   :  { %v463_v7 = vadd.f32 %v461_v5, %v459_v43 }
 0x181   :  { %v464_v32 = vmul.f32 %v462_v6, %v462_v6 }
 0x182   :  { %v465_v9 = vmul.f32 %v463_v7, %v463_v7 }
 0x183   :  { %v466_v2 = vsel %vm80_vm4, %v464_v32, 0.0 }
 0x184   :  { %v467_v60 = vsel %vm80_vm4, %v465_v9, 0.0 }
 0x185   :  { %v468_v10 = vadd.f32 %v467_v60, %v466_v2 }
 0x187   :  { %v469_v42 = vrot.slane %v468_v10, 4 }
 0x189   :  { %v470_v11 = vadd.f32 %v469_v42, %v468_v10 }
 0x18b   :  { %v471_v27 = vrot.slane %v470_v11, 2 }
 0x18d   :  { %v472_v12 = vadd.f32 %v471_v27, %v470_v11 }
 0x18f   :  { %v473_v13 = vrot.slane %v472_v12, 1 }
 0x191   :  { %v474_v18 = vadd.f32 %v473_v13, %v472_v12 }
 0x193   :  { %476 = vst.msk [vmem:[#allocation8] sm:$0x1] %vm475_vm15, %v474_v18 }
 0x194   :  { %487 = dma.vmem_to_hbm [thread:$0]  %s483_s17, 16, %s485_s20, [#allocation4]  }
 0x195   :  { %623 = dma.done.wait [#allocation4], 16  }
 0x196   :  { %624 = vsyncadd [#allocation4], 4294967280 }
 0x197   :  { %492 = vsyncpa [#allocation3], 1 }
 0x198   :  { %493 = vsyncpa [#allocation6], 1 }
 0x199   :  { %494 = vsyncpa [#allocation4], 1 }

</bundles_post_ra>
